<compile_context>
chip_gen: v7x
topology: tpu7x:2x2x1
jax: 0.10.0
libtpu: 0.0.40
codegen_flags: <defaults>
</compile_context>

<pallas_src>
import math

import jax
import jax.numpy as jnp
from jax.experimental import pallas as pl
from jax.experimental.pallas import tpu as pltpu


def _normalize_kernel(x_ref, mean_ref, std_ref, o_ref):
    # (x - mean) * (1 / clamp(std, 1e-6)); reciprocal computed once on the
    # (1, W) row (exact, preserves the 1e-6 clamp semantics) then broadcast.
    inv = 1.0 / jnp.maximum(std_ref[...], 1e-6)
    o_ref[...] = (x_ref[...] - mean_ref[...]) * inv


def _unnormalize_kernel(x_ref, mean_ref, std_ref, o_ref):
    # x * std + mean  (no clamp on the inverse path, matching PyTorch)
    o_ref[...] = x_ref[...] * std_ref[...] + mean_ref[...]


def _vmem_budgets():
    """Per-generation (vmem_limit_bytes, max_tile_bytes)."""
    cap = None
    try:
        info = pltpu.get_tpu_info()
        cap = getattr(info, "vmem_capacity_bytes", None)
    except Exception:  # pragma: no cover - query unavailable
        cap = None
    if not cap:
        cap = 64 * 1024 * 1024  # conservative (v7x-sized) fallback
    # v5e/v6e (128 MiB VMEM): limit 64 MiB, tiles up to 8 MiB.
    # v7x      (64 MiB VMEM): limit 32 MiB, tiles up to 4 MiB.
    vmem_limit = min(cap // 2, 64 * 1024 * 1024)
    max_tile_bytes = max(512 * 1024, vmem_limit // 8)
    return vmem_limit, max_tile_bytes


def _choose_tile_rows(rows, width, max_tile_bytes, itemsize):
    """Largest row tile (multiple of 8, or the full row count) under budget."""
    row_bytes = max(1, width * itemsize)
    max_rows = max(8, max_tile_bytes // row_bytes)
    if rows <= max_rows:
        return rows  # single full block; full-extent dims are always legal
    return max(8, (max_rows // 8) * 8)


def normalizer_forward(x, mean, std, *, inverse=False, tile_rows=None):
    """Pallas version of Normalizer.forward.

    x:    [..., D] float32
    mean: [D]      float32
    std:  [D]      float32
    tile_rows: optional override of the row tile (testing / tuning); must be
               a multiple of 8 or >= the total row count.
    """
    orig_shape = x.shape
    D = orig_shape[-1]
    B = 1
    for s in orig_shape[:-1]:
        B *= s
    x2 = x.reshape(B, D)
    dtype = x2.dtype
    itemsize = dtype.itemsize

    mean_row = mean.reshape(1, D).astype(dtype)
    std_row = std.reshape(1, D).astype(dtype)

    # ---- lane-dense layout ------------------------------------------------
    # Pack k rows so the working row width W = lcm(D, 128) is lane-dense.
    if D % 128 == 0:
        k = 1
    else:
        k = 128 // math.gcd(D, 128)

    pad_b = 0
    if k > 1 and B % k != 0:
        if D >= 128:
            # Unpacked full-D blocks: zero wrapper copies; only the trailing
            # partial 128-lane group gets masked stores.
            k = 1
        else:
            pad_b = (-B) % k  # small-D: one pad copy beats a narrow-lane kernel
            # TODO(synk): A/B the unpadded (tile_rows, D) masked-store path here.

    if k > 1:
        xw = jnp.pad(x2, ((0, pad_b), (0, 0))) if pad_b else x2
        rows = (B + pad_b) // k
        W = D * k
        xp = xw.reshape(rows, W)  # free when pad_b == 0 (contiguous)
        mean_p = jnp.tile(mean_row, (1, k))
        std_p = jnp.tile(std_row, (1, k))
    else:
        rows, W = B, D
        xp = x2
        mean_p, std_p = mean_row, std_row

    # ---- row tiling: byte-budgeted, ragged last block allowed --------------
    vmem_limit, max_tile_bytes = _vmem_budgets()
    if tile_rows is None:
        tile_rows = _choose_tile_rows(rows, W, max_tile_bytes, itemsize)
    tile_rows = max(1, min(tile_rows, rows))
    grid = (pl.cdiv(rows, tile_rows),)  # no pad_rows copy; tail block is masked

    kernel = _unnormalize_kernel if inverse else _normalize_kernel

    out = pl.pallas_call(
        kernel,
        out_shape=jax.ShapeDtypeStruct((rows, W), dtype),
        grid_spec=pltpu.PrefetchScalarGridSpec(
            num_scalar_prefetch=0,
            grid=grid,
            in_specs=[
                pl.BlockSpec((tile_rows, W), lambda i: (i, 0)),  # x tile
                pl.BlockSpec((1, W), lambda i: (0, 0)),          # mean (resident)
                pl.BlockSpec((1, W), lambda i: (0, 0)),          # std  (resident)
            ],
            out_specs=pl.BlockSpec((tile_rows, W), lambda i: (i, 0)),
        ),
        compiler_params=pltpu.CompilerParams(
            # TODO(synk): on v7x, gate this to pltpu.CORE_PARALLEL (2 TCs) for
            # ~2x effective HBM draw on this memory-bound kernel.
            dimension_semantics=("parallel",),
            vmem_limit_bytes=vmem_limit,
        ),
    )(xp, mean_p, std_p)

    # ---- undo packing ------------------------------------------------------
    if k > 1:
        out = out.reshape(rows * k, D)
        if pad_b:
            out = out[:B]
    return out.reshape(orig_shape)


if __name__ == "__main__":
    key = jax.random.PRNGKey(0)
    kx, km, ks, kx2, kx3, kx4 = jax.random.split(key, 6)

    # --- main test: B=16, D=32 (lcm packing, k=4, zero wrapper copies) ------
    B, D = 16, 32
    x = jax.random.normal(kx, (B, D), dtype=jnp.float32)
    mean = 0.1 * jax.random.normal(km, (D,), dtype=jnp.float32)
    std = 1.0 + 0.5 * jnp.abs(jax.random.normal(ks, (D,), dtype=jnp.float32))

    y = normalizer_forward(x, mean, std, inverse=False)
    jax.block_until_ready(y)
    y_ref = (x - mean[None, :]) / jnp.maximum(std[None, :], 1e-6)
    assert jnp.allclose(y, y_ref, atol=1e-5, rtol=1e-5)

    z = normalizer_forward(y, mean, std, inverse=True)
    jax.block_until_ready(z)
    z_ref = y * std[None, :] + mean[None, :]
    assert jnp.allclose(z, z_ref, atol=1e-5, rtol=1e-5)
    assert jnp.allclose(z, x, atol=1e-4, rtol=1e-4)

    # --- small-D ragged batch: D=5 -> k=128, batch padded to a multiple of k
    B2, D2 = 7, 5
    x2 = jax.random.normal(kx2, (B2, D2), dtype=jnp.float32)
    mean2 = 0.1 * jnp.arange(D2, dtype=jnp.float32)
    std2 = 1.0 + 0.25 * jnp.arange(D2, dtype=jnp.float32)
    y2 = normalizer_forward(x2, mean2, std2, inverse=False)
    jax.block_until_ready(y2)
    y2_ref = (x2 - mean2[None, :]) / jnp.maximum(std2[None, :], 1e-6)
    assert jnp.allclose(y2, y2_ref, atol=1e-5, rtol=1e-5)
    z2 = normalizer_forward(y2, mean2, std2, inverse=True)
    jax.block_until_ready(z2)
    assert jnp.allclose(z2, x2, atol=1e-4, rtol=1e-4)

    # --- unpacked full-D fallback: D=200 >= 128, B not a multiple of k -------
    B3, D3 = 12, 200
    x3 = jax.random.normal(kx3, (B3, D3), dtype=jnp.float32)
    mean3 = 0.05 * jnp.arange(D3, dtype=jnp.float32)
    std3 = 1.0 + 0.01 * jnp.arange(D3, dtype=jnp.float32)
    y3 = normalizer_forward(x3, mean3, std3, inverse=False)
    jax.block_until_ready(y3)
    y3_ref = (x3 - mean3[None, :]) / jnp.maximum(std3[None, :], 1e-6)
    assert jnp.allclose(y3, y3_ref, atol=1e-5, rtol=1e-5)

    # --- ragged row grid (partial last block, no pad_rows copy) --------------
    B4, D4 = 20, 128
    x4 = jax.random.normal(kx4, (B4, D4), dtype=jnp.float32)
    mean4 = 0.1 * jnp.ones((D4,), jnp.float32)
    std4 = 2.0 * jnp.ones((D4,), jnp.float32)
    y4 = normalizer_forward(x4, mean4, std4, inverse=False, tile_rows=8)
    jax.block_until_ready(y4)
    y4_ref = (x4 - mean4[None, :]) / jnp.maximum(std4[None, :], 1e-6)
    assert jnp.allclose(y4, y4_ref, atol=1e-5, rtol=1e-5)

    print("KERNEL_OK")
</pallas_src>

<mosaic_0001>
module attributes {stable_mosaic.version = 11 : i64} {
  func.func @_normalize_kernel(%arg0: i32, %arg1: memref<4x128xf32, #tpu.memory_space<vmem>>, %arg2: memref<1x128xf32, #tpu.memory_space<vmem>>, %arg3: memref<1x128xf32, #tpu.memory_space<vmem>>, %arg4: memref<4x128xf32, #tpu.memory_space<vmem>>) attributes {dimension_semantics = [#tpu.dimension_semantics<parallel>], iteration_bounds = array<i64: 1>, scalar_prefetch = 0 : i64, scratch_operands = 0 : i64, tpu.core_type = #tpu.core_type<tc>, window_params = [{transform_indices = @transform_0, window_bounds = array<i64: 4, 128>}, {pipeline_mode = #tpu.pipeline_mode<synchronous>, transform_indices = @transform_1, window_bounds = array<i64: 1, 128>}, {pipeline_mode = #tpu.pipeline_mode<synchronous>, transform_indices = @transform_2, window_bounds = array<i64: 1, 128>}, {transform_indices = @transform_3, window_bounds = array<i64: 4, 128>}]} {
    %c0 = arith.constant 0 : index
    %c0_0 = arith.constant 0 : index
    %0 = vector.load %arg3[%c0, %c0_0] : memref<1x128xf32, #tpu.memory_space<vmem>>, vector<1x128xf32>
    %cst = arith.constant 9.99999997E-7 : f32
    %1 = vector.broadcast %cst : f32 to vector<1x128xf32>
    %2 = arith.maximumf %0, %1 : vector<1x128xf32>
    %cst_1 = arith.constant 1.000000e+00 : f32
    %3 = vector.broadcast %cst_1 : f32 to vector<1x128xf32>
    %4 = arith.divf %3, %2 : vector<1x128xf32>
    %c0_2 = arith.constant 0 : index
    %c0_3 = arith.constant 0 : index
    %5 = vector.load %arg1[%c0_2, %c0_3] : memref<4x128xf32, #tpu.memory_space<vmem>>, vector<4x128xf32>
    %c0_4 = arith.constant 0 : index
    %c0_5 = arith.constant 0 : index
    %6 = vector.load %arg2[%c0_4, %c0_5] : memref<1x128xf32, #tpu.memory_space<vmem>>, vector<1x128xf32>
    %7 = vector.broadcast %6 : vector<1x128xf32> to vector<4x128xf32>
    %8 = arith.subf %5, %7 : vector<4x128xf32>
    %9 = vector.broadcast %4 : vector<1x128xf32> to vector<4x128xf32>
    %10 = arith.mulf %8, %9 : vector<4x128xf32>
    %c0_6 = arith.constant 0 : index
    %c0_7 = arith.constant 0 : index
    %11 = vector.load %arg4[%c0_6, %c0_7] : memref<4x128xf32, #tpu.memory_space<vmem>>, vector<4x128xf32>
    tpu.vector_store %arg4[%c0_6, %c0_7], %10 {strides = array<i32>} : memref<4x128xf32, #tpu.memory_space<vmem>>, vector<4x128xf32>,
    return
  }
  func.func @transform_0(%arg0: i32) -> (i32, i32) {
    %c0_i32 = arith.constant 0 : i32
    %c0_i32_0 = arith.constant 0 : i32
    return %arg0, %c0_i32 : i32, i32
  }
  func.func @transform_1(%arg0: i32) -> (i32, i32) {
    %c0_i32 = arith.constant 0 : i32
    %c0_i32_0 = arith.constant 0 : i32
    %c0_i32_1 = arith.constant 0 : i32
    return %c0_i32, %c0_i32_0 : i32, i32
  }
  func.func @transform_2(%arg0: i32) -> (i32, i32) {
    %c0_i32 = arith.constant 0 : i32
    %c0_i32_0 = arith.constant 0 : i32
    %c0_i32_1 = arith.constant 0 : i32
    return %c0_i32, %c0_i32_0 : i32, i32
  }
  func.func @transform_3(%arg0: i32) -> (i32, i32) {
    %c0_i32 = arith.constant 0 : i32
    %c0_i32_0 = arith.constant 0 : i32
    return %arg0, %c0_i32 : i32, i32
  }
}

</mosaic_0001>

<bundles_post_ra>
// kernel: tpu_custom_call.1
= control target key start
LH: loop header
LB: loop body
LE: loop exit
PB: predicated region body
PF: predicated region fallthrough
CT: control target
= control target key end

     0   :  { %8 = vsyncpa [#allocation3], 0  ;;  %s168_s0 = inlined_call_operand.hbm [shape: f32[4,128], index: 0, kind: input, shape index: {}]   ;;  %s169_s1 = inlined_call_operand.vmem [shape: f32[1,128], index: 1, kind: input, shape index: {}]   ;;  %s170_s2 = inlined_call_operand.vmem [shape: f32[1,128], index: 2, kind: input, shape index: {}]   ;;  %s171_s3 = inlined_call_operand.hbm [shape: f32[4,128], index: 3, kind: output, shape index: {}]  }
   0x1   :  { %9 = vsyncpa [#allocation4], 0  ;;  %s116_s12 = smov [#allocation2]   ;;  %s68_s16 = scalar_lea.hbm %s168_s0, 64 }
   0x2   :  { %s16_s13 = sshll.u32 %s116_s12, 4  ;;  %p69_p0 = scmp.ne.s32.totalorder %s168_s0, %s68_s16  ;;  %s17_s13 = int_to_ptr.vmem [resolvable:$true] %s16_s13 }
   0x3   :  { %p72_p1 = scmp.lt.u32.totalorder %s68_s16, %s168_s0 }
   0x5   :  { %p74_p2 = pnand %p72_p1, %p69_p0 }
   0x7   :  { %77 = shalt.err (!%p74_p2)
}
   0x8   :  { %s78_s21 = scalar_lea.vmem %s17_s13, 64  ;;  %p83_p4 = scmp.lt.s32.totalorder %s17_s13, %s17_s13 }
   0x9   :  { %p79_p3 = scmp.ne.s32.totalorder %s17_s13, %s78_s21  ;;  %p84_p5 = scmp.lt.s32.totalorder %s78_s21, %s78_s21 }
   0xb   :  { %p85_p6 = por %p84_p5, %p83_p4 }
   0xd   :  { %p86_p7 = pnand %p85_p6, %p79_p3 }
   0xf   :  { %89 = shalt.err (!%p86_p7)
}
  0x10   :  { %19 = dma.hbm_to_vmem [thread:$0]  %s168_s0, 64, %s17_s13, [#allocation3]  }
  0x11   :  { %112 = dma.done.wait [#allocation3], 64  }
  0x12   :  { %113 = vsyncadd [#allocation3], 4294967232  ;;  %v27_v0 = vld [vmem:[%s170_s2] sm:$0x1]  ;;  %v41_v2 = vlaneseq  ;;  %s117_s28 = smov [#allocation5]  }
  0x13   :  { %v28_v1 = vmax.f32 %v27_v0, 1e-06  ;;  %v31_v4 = vld [vmem:[#allocation2] sm:$0xf]  ;;  %s54_s0 = sshll.u32 %s117_s28, 4  ;;  %s55_s0 = int_to_ptr.vmem [resolvable:$true] %s54_s0 }
  0x14   :  { %v42_v3 = vshrl.u32 %v41_v2, 7  ;;  %v63_v5 = vld [vmem:[%s169_s1] ss:$0 sm:$0xff]  ;;  %s90_s29 = scalar_lea.vmem %s55_s0, 64  ;;  %p95_p9 = scmp.lt.s32.totalorder %s55_s0, %s55_s0 }
  0x15   :  { %66 = vrcp.f32 %v28_v1  ;;  %v39_v7 = vsub.f32 %v31_v4, %v63_v5  ;;  %p91_p8 = scmp.ne.s32.totalorder %s55_s0, %s90_s29  ;;  %p96_p10 = scmp.lt.s32.totalorder %s90_s29, %s90_s29 }
  0x16   :  { %v43_v6 = vsub.s32 0, %v42_v3 }
  0x17   :  { %p97_p11 = por %p96_p10, %p95_p9 }
  0x19   :  { %p98_p12 = pnand %p97_p11, %p91_p8 }
  0x1f   :  { %v67_v8 = vpop.eup %66 }
  0x20   :  { %v44_v9 = vrot.slane %v67_v8, %v43_v6 }
  0x22   :  { %v46_v10 = vmul.f32 %v44_v9, %v39_v7 }
  0x24   :  { %47 = vst [vmem:[#allocation5] sm:$0xf] %v46_v10 }
  0x25   :  { %101 = shalt.err (!%p98_p12)
}
  0x26   :  { %s102_s1 = scalar_lea.hbm %s171_s3, 64 }
  0x27   :  { %p103_p13 = scmp.ne.s32.totalorder %s171_s3, %s102_s1  ;;  %p106_p0 = scmp.lt.u32.totalorder %s102_s1, %s171_s3 }
  0x29   :  { %p108_p1 = pnand %p106_p0, %p103_p13 }
  0x2b   :  { %111 = shalt.err (!%p108_p1)
}
  0x2c   :  { %57 = dma.vmem_to_hbm [thread:$0]  %s55_s0, 64, %s171_s3, [#allocation4]  }
  0x2d   :  { %114 = dma.done.wait [#allocation4], 64  }
  0x2e   :  { %115 = vsyncadd [#allocation4], 4294967232 }
  0x2f   :  { %61 = vsyncpa [#allocation3], 1 }
  0x30   :  { %62 = vsyncpa [#allocation4], 1 }

</bundles_post_ra>
